<compile_context>
chip_gen: v7x
topology: tpu7x:2x2x1
jax: 0.10.0
libtpu: 0.0.40
codegen_flags: <defaults>
</compile_context>

<pallas_src>
import functools

import jax
import jax.numpy as jnp
from jax.experimental import pallas as pl
from jax.experimental.pallas import tpu as pltpu

_NEG_BIG = -1e30  # finite "-inf" used to mask padded class columns
_LANE = 128
_SUBLANE = 8


def _round_up(n, m):
    return (n + m - 1) // m * m


def mlp_kernel(x_ref, w1_ref, b1_ref, w2_ref, b2_ref, logits_ref, probs_ref):
    # x_ref:   (bt, D)   one batch tile of flattened inputs (last tile may be clipped)
    # w1_ref:  (D, H)    fc1 weight, natural layout -> plain (M,K)@(K,N) MXU matmul
    # b1_ref:  (1, H)
    # w2_ref:  (H, Cp)   fc2 weight, classes zero-padded to lane width (128)
    # b2_ref:  (1, Cp)   fc2 bias; padded class slots hold -1e30 (softmax mask)
    x = x_ref[...]

    # fc1 + ReLU (MXU, f32 accumulation).
    h = jnp.dot(x, w1_ref[...], preferred_element_type=jnp.float32)
    h = jnp.maximum(h + b1_ref[...], 0.0)

    # fc2 -> lane-dense (bt, 128) logits; padded class columns end up at ~-1e30.
    logits = jnp.dot(h, w2_ref[...], preferred_element_type=jnp.float32) + b2_ref[...]
    logits_ref[...] = logits.astype(logits_ref.dtype)

    # Numerically stable softmax over classes; padded columns underflow to 0.
    # Exact divide (not approx reciprocal): kernel is HBM-bound, EUP cost is hidden,
    # and rows sum to 1 for strict parity with torch.softmax.
    m = jnp.max(logits, axis=1, keepdims=True)
    e = jnp.exp(logits - m)
    denom = jnp.sum(e, axis=1, keepdims=True)
    probs_ref[...] = (e / denom).astype(probs_ref.dtype)


def pack_params(w1, b1, w2, b2):
    """One-time parameter packing (hoisted out of the per-call hot path).

    w1: [D, H], b1: [H], w2: [H, C], b2: [C]  ->  lane-padded kernel operands.
    """
    H = w1.shape[1]
    C = w2.shape[1]
    Cp = _round_up(C, _LANE)
    b1_2d = b1.reshape(1, H)
    w2_p = jnp.pad(w2, ((0, 0), (0, Cp - C)))
    b2_p = jnp.concatenate(
        [b2, jnp.full((Cp - C,), _NEG_BIG, dtype=b2.dtype)]).reshape(1, Cp)
    return w1, b1_2d, w2_p, b2_p


@functools.partial(jax.jit, static_argnames=("batch_tile",))
def mlp_forward_packed(x, w1, b1_2d, w2_p, b2_p, *, batch_tile=512):
    """x: [B, ...] f32 (flattened to [B, D]); packed params from pack_params()."""
    B = x.shape[0]
    x2d = x.reshape(B, -1)                 # same as torch .view(B, -1); no copy
    D = x2d.shape[1]
    H = w1.shape[1]
    Cp = w2_p.shape[1]

    # Batch tiling: large sublane-aligned tiles (amortize ~0.35 us/step), no
    # HBM-side padding of x -- Pallas clips the ragged last tile.
    bt = max(_SUBLANE, _round_up(min(batch_tile, B), _SUBLANE))
    n_tiles = pl.cdiv(B, bt)
    # v7x megacore: when the batch is big enough to split, make sure the
    # "parallel" batch axis has >= 2 grid steps so both TensorCores run.
    if n_tiles < 2 and B > _SUBLANE:
        bt = _round_up(pl.cdiv(B, 2), _SUBLANE)
        n_tiles = pl.cdiv(B, bt)

    out_shapes = (
        jax.ShapeDtypeStruct((B, Cp), jnp.float32),   # logits (class-padded)
        jax.ShapeDtypeStruct((B, Cp), jnp.float32),   # probabilities (class-padded)
    )

    grid_spec = pltpu.PrefetchScalarGridSpec(
        num_scalar_prefetch=0,
        grid=(n_tiles,),
        in_specs=[
            pl.BlockSpec((bt, D), lambda i: (i, 0)),   # streaming batch tile
            pl.BlockSpec((D, H), lambda i: (0, 0)),    # w1: DMA'd once, VMEM-resident
            pl.BlockSpec((1, H), lambda i: (0, 0)),    # b1
            pl.BlockSpec((H, Cp), lambda i: (0, 0)),   # w2 (padded): VMEM-resident
            pl.BlockSpec((1, Cp), lambda i: (0, 0)),   # b2 (padded, masked)
        ],
        out_specs=[
            pl.BlockSpec((bt, Cp), lambda i: (i, 0)),
            pl.BlockSpec((bt, Cp), lambda i: (i, 0)),
        ],
    )

    cost = pl.CostEstimate(
        flops=2 * B * D * H + 2 * B * H * Cp,
        transcendentals=B * Cp,
        bytes_accessed=4 * (B * D + D * H + H * Cp + 2 * B * Cp),
    )

    logits_p, probs_p = pl.pallas_call(
        mlp_kernel,
        out_shape=out_shapes,
        grid_spec=grid_spec,
        compiler_params=pltpu.CompilerParams(
            # Batch tiles are independent -> megacore sharding on v7x.
            dimension_semantics=("parallel",),
        ),
        cost_estimate=cost,
    )(x2d, w1, b1_2d, w2_p, b2_p)

    return logits_p, probs_p


def mlp_forward(x, w1, b1, w2, b2, *, batch_tile=512):
    """Convenience wrapper matching the torch MLP forward:
      logits = relu(x.view(B, -1) @ w1 + b1) @ w2 + b2 ; probs = softmax(logits, dim=1)
    Returns (logits [B, C], probabilities [B, C]).
    """
    C = w2.shape[1]
    packed = pack_params(w1, b1, w2, b2)      # one-time prep, outside the jit hot path
    logits_p, probs_p = mlp_forward_packed(x, *packed, batch_tile=batch_tile)
    return logits_p[:, :C], probs_p[:, :C]


if __name__ == "__main__":
    # Shapes implied by the module: input flattened to input_size features.
    B, Cc, Hh, Ww = 2, 4, 16, 16           # x: [2, 4, 16, 16]
    input_size = Cc * Hh * Ww              # 1024
    hidden_size = 32
    num_classes = 10

    key = jax.random.PRNGKey(0)
    kx, kw1, kb1, kw2, kb2 = jax.random.split(key, 5)

    x = jax.random.normal(kx, (B, Cc, Hh, Ww), dtype=jnp.float32)

    # Deterministic param init, mimicking nn.Linear's U(-1/sqrt(fan_in), 1/sqrt(fan_in)).
    bound1 = 1.0 / (input_size ** 0.5)
    w1 = jax.random.uniform(kw1, (input_size, hidden_size), jnp.float32, -bound1, bound1)
    b1 = jax.random.uniform(kb1, (hidden_size,), jnp.float32, -bound1, bound1)
    bound2 = 1.0 / (hidden_size ** 0.5)
    w2 = jax.random.uniform(kw2, (hidden_size, num_classes), jnp.float32, -bound2, bound2)
    b2 = jax.random.uniform(kb2, (num_classes,), jnp.float32, -bound2, bound2)

    logits, probs = mlp_forward(x, w1, b1, w2, b2)
    jax.block_until_ready((logits, probs))

    # Reference check in plain JAX.
    x2d = x.reshape(B, -1)
    ref_logits = jnp.maximum(x2d @ w1 + b1, 0.0) @ w2 + b2
    ref_probs = jax.nn.softmax(ref_logits, axis=1)

    assert logits.shape == (B, num_classes) and probs.shape == (B, num_classes)
    assert jnp.allclose(logits, ref_logits, atol=1e-4, rtol=1e-4)
    assert jnp.allclose(probs, ref_probs, atol=1e-5, rtol=1e-4)
    assert jnp.allclose(jnp.sum(probs, axis=1), 1.0, atol=1e-5)

    print("KERNEL_OK")
</pallas_src>

<mosaic_0001>
module attributes {stable_mosaic.version = 11 : i64} {
  func.func @mlp_kernel(%arg0: i32, %arg1: memref<8x1024xf32, #tpu.memory_space<vmem>>, %arg2: memref<1024x32xf32, #tpu.memory_space<vmem>>, %arg3: memref<1x32xf32, #tpu.memory_space<vmem>>, %arg4: memref<32x128xf32, #tpu.memory_space<vmem>>, %arg5: memref<1x128xf32, #tpu.memory_space<vmem>>, %arg6: memref<8x128xf32, #tpu.memory_space<vmem>>, %arg7: memref<8x128xf32, #tpu.memory_space<vmem>>) attributes {dimension_semantics = [#tpu.dimension_semantics<parallel>], iteration_bounds = array<i64: 1>, scalar_prefetch = 0 : i64, scratch_operands = 0 : i64, tpu.core_type = #tpu.core_type<tc>, window_params = [{transform_indices = @transform_0, window_bounds = array<i64: 8, 1024>}, {pipeline_mode = #tpu.pipeline_mode<synchronous>, transform_indices = @transform_1, window_bounds = array<i64: 1024, 32>}, {pipeline_mode = #tpu.pipeline_mode<synchronous>, transform_indices = @transform_2, window_bounds = array<i64: 1, 32>}, {pipeline_mode = #tpu.pipeline_mode<synchronous>, transform_indices = @transform_3, window_bounds = array<i64: 32, 128>}, {pipeline_mode = #tpu.pipeline_mode<synchronous>, transform_indices = @transform_4, window_bounds = array<i64: 1, 128>}, {transform_indices = @transform_5, window_bounds = array<i64: 8, 128>}, {transform_indices = @transform_6, window_bounds = array<i64: 8, 128>}]} {
    %c0 = arith.constant 0 : index
    %c0_0 = arith.constant 0 : index
    %0 = vector.load %arg1[%c0, %c0_0] : memref<8x1024xf32, #tpu.memory_space<vmem>>, vector<8x1024xf32>
    %c0_1 = arith.constant 0 : index
    %c0_2 = arith.constant 0 : index
    %1 = vector.load %arg2[%c0_1, %c0_2] : memref<1024x32xf32, #tpu.memory_space<vmem>>, vector<1024x32xf32>
    %cst = arith.constant dense<0.000000e+00> : vector<8x32xf32>
    %2 = tpu.matmul %0, %1, %cst {dimension_numbers = #tpu.dot_dimension_numbers<[1], [0], [0], [1], [0, 0, 1, 1], [], []>} : vector<8x1024xf32>, vector<1024x32xf32>, vector<8x32xf32> -> vector<8x32xf32>
    %c0_3 = arith.constant 0 : index
    %c0_4 = arith.constant 0 : index
    %3 = vector.load %arg3[%c0_3, %c0_4] : memref<1x32xf32, #tpu.memory_space<vmem>>, vector<1x32xf32>
    %4 = vector.broadcast %3 : vector<1x32xf32> to vector<8x32xf32>
    %5 = arith.addf %2, %4 : vector<8x32xf32>
    %cst_5 = arith.constant 0.000000e+00 : f32
    %6 = vector.broadcast %cst_5 : f32 to vector<8x32xf32>
    %7 = arith.maximumf %5, %6 : vector<8x32xf32>
    %c0_6 = arith.constant 0 : index
    %c0_7 = arith.constant 0 : index
    %8 = vector.load %arg4[%c0_6, %c0_7] : memref<32x128xf32, #tpu.memory_space<vmem>>, vector<32x128xf32>
    %cst_8 = arith.constant dense<0.000000e+00> : vector<8x128xf32>
    %9 = tpu.matmul %7, %8, %cst_8 {dimension_numbers = #tpu.dot_dimension_numbers<[1], [0], [0], [1], [0, 0, 1, 1], [], []>} : vector<8x32xf32>, vector<32x128xf32>, vector<8x128xf32> -> vector<8x128xf32>
    %c0_9 = arith.constant 0 : index
    %c0_10 = arith.constant 0 : index
    %10 = vector.load %arg5[%c0_9, %c0_10] : memref<1x128xf32, #tpu.memory_space<vmem>>, vector<1x128xf32>
    %11 = vector.broadcast %10 : vector<1x128xf32> to vector<8x128xf32>
    %12 = arith.addf %9, %11 : vector<8x128xf32>
    %c0_11 = arith.constant 0 : index
    %c0_12 = arith.constant 0 : index
    %13 = vector.load %arg6[%c0_11, %c0_12] : memref<8x128xf32, #tpu.memory_space<vmem>>, vector<8x128xf32>
    tpu.vector_store %arg6[%c0_11, %c0_12], %12 {strides = array<i32>} : memref<8x128xf32, #tpu.memory_space<vmem>>, vector<8x128xf32>,
    %cst_13 = arith.constant dense<0xFF800000> : vector<8xf32>
    %14 = vector.multi_reduction <maximumf>, %12, %cst_13 [1] : vector<8x128xf32> to vector<8xf32>
    %15 = vector.shape_cast %14 : vector<8xf32> to vector<8x1xf32>
    %16 = vector.broadcast %15 : vector<8x1xf32> to vector<8x128xf32>
    %17 = arith.subf %12, %16 : vector<8x128xf32>
    %18 = math.exp %17 : vector<8x128xf32>
    %cst_14 = arith.constant dense<0.000000e+00> : vector<8xf32>
    %19 = vector.multi_reduction <add>, %18, %cst_14 [1] : vector<8x128xf32> to vector<8xf32>
    %20 = vector.shape_cast %19 : vector<8xf32> to vector<8x1xf32>
    %21 = vector.broadcast %20 : vector<8x1xf32> to vector<8x128xf32>
    %22 = arith.divf %18, %21 : vector<8x128xf32>
    %c0_15 = arith.constant 0 : index
    %c0_16 = arith.constant 0 : index
    %23 = vector.load %arg7[%c0_15, %c0_16] : memref<8x128xf32, #tpu.memory_space<vmem>>, vector<8x128xf32>
    tpu.vector_store %arg7[%c0_15, %c0_16], %22 {strides = array<i32>} : memref<8x128xf32, #tpu.memory_space<vmem>>, vector<8x128xf32>,
    return
  }
  func.func @transform_0(%arg0: i32) -> (i32, i32) {
    %c0_i32 = arith.constant 0 : i32
    %c0_i32_0 = arith.constant 0 : i32
    return %arg0, %c0_i32 : i32, i32
  }
  func.func @transform_1(%arg0: i32) -> (i32, i32) {
    %c0_i32 = arith.constant 0 : i32
    %c0_i32_0 = arith.constant 0 : i32
    %c0_i32_1 = arith.constant 0 : i32
    return %c0_i32, %c0_i32_0 : i32, i32
  }
  func.func @transform_2(%arg0: i32) -> (i32, i32) {
    %c0_i32 = arith.constant 0 : i32
    %c0_i32_0 = arith.constant 0 : i32
    %c0_i32_1 = arith.constant 0 : i32
    return %c0_i32, %c0_i32_0 : i32, i32
  }
  func.func @transform_3(%arg0: i32) -> (i32, i32) {
    %c0_i32 = arith.constant 0 : i32
    %c0_i32_0 = arith.constant 0 : i32
    %c0_i32_1 = arith.constant 0 : i32
    return %c0_i32, %c0_i32_0 : i32, i32
  }
  func.func @transform_4(%arg0: i32) -> (i32, i32) {
    %c0_i32 = arith.constant 0 : i32
    %c0_i32_0 = arith.constant 0 : i32
    %c0_i32_1 = arith.constant 0 : i32
    return %c0_i32, %c0_i32_0 : i32, i32
  }
  func.func @transform_5(%arg0: i32) -> (i32, i32) {
    %c0_i32 = arith.constant 0 : i32
    %c0_i32_0 = arith.constant 0 : i32
    return %arg0, %c0_i32 : i32, i32
  }
  func.func @transform_6(%arg0: i32) -> (i32, i32) {
    %c0_i32 = arith.constant 0 : i32
    %c0_i32_0 = arith.constant 0 : i32
    return %arg0, %c0_i32 : i32, i32
  }
}

</mosaic_0001>

<bundles_post_ra>
// kernel: mlp_forward_packed.1
= control target key start
LH: loop header
LB: loop body
LE: loop exit
PB: predicated region body
PF: predicated region fallthrough
CT: control target
= control target key end

     0   :  { %12 = vsyncpa [#allocation3], 0  ;;  %s1532_s0 = inlined_call_operand.vmem [shape: f32[2,1024], index: 0, kind: input, shape index: {}]   ;;  %s1533_s1 = inlined_call_operand.vmem [shape: f32[1024,32], index: 1, kind: input, shape index: {}]   ;;  %s1534_s2 = inlined_call_operand.vmem [shape: f32[1,32], index: 2, kind: input, shape index: {}]   ;;  %s1535_s3 = inlined_call_operand.vmem [shape: f32[32,128], index: 3, kind: input, shape index: {}]   ;;  %s1536_s4 = inlined_call_operand.vmem [shape: f32[1,128], index: 4, kind: input, shape index: {}]   ;;  %s1537_s5 = inlined_call_operand.hbm [shape: f32[2,128], index: 5, kind: output, shape index: {0}]   ;;  %s1538_s6 = inlined_call_operand.hbm [shape: f32[2,128], index: 6, kind: output, shape index: {1}]  }
   0x1   :  { %13 = vsyncpa [#allocation5], 0  ;;  %v48_v0 = vld [vmem:[%s1533_s1 + $0x80] sm:$0xff]  ;;  %v49_v1 = vld [vmem:[%s1533_s1 + $0x88] sm:$0xff]  ;;  %v1029_v54 = vmov 1983009808   ;;  %v182_v56 = vlaneseq }
   0x2   :  { %v823_v2 = vpack.c.bf16 %v49_v1, %v48_v0  ;;  %v32_v3 = vld [vmem:[%s1533_s1] sm:$0xff]  ;;  %v33_v4 = vld [vmem:[%s1533_s1 + $0x8] sm:$0xff]  ;;  %v50_v12 = vld [vmem:[%s1533_s1 + $0x90] sm:$0xff]  ;;  %v180_v55 = vunpack.c.l.s4 %v1029_v54  ;;  %vm1031_vm0 = vmmov 0   ;;  %vm547_vm1 = vcmask 261120  }
   0x3   :  { %v80_v5 = vld [vmem:[%s1533_s1 + $0x180] sm:$0xff]  ;;  %v825_v6 = vpack.c.bf16 %v33_v4, %v32_v3  ;;  %v81_v7 = vld [vmem:[%s1533_s1 + $0x188] sm:$0xff]  ;;  %v51_v13 = vld [vmem:[%s1533_s1 + $0x98] sm:$0xff] }
   0x4   :  { %v64_v8 = vld [vmem:[%s1533_s1 + $0x100] sm:$0xff]  ;;  %v65_v9 = vld [vmem:[%s1533_s1 + $0x108] sm:$0xff]  ;;  %824 = vmatprep.subr.bf16.mxu0 %v823_v2  ;;  %v855_v10 = vpack.c.bf16 %v81_v7, %v80_v5  ;;  %v34_v14 = vld [vmem:[%s1533_s1 + $0x10] sm:$0xff]  ;;  %v827_v15 = vpack.c.bf16 %v51_v13, %v50_v12  ;;  %v181_v5 = vunpack.c.0.s8 %v180_v55 }
   0x5   :  { %v857_v11 = vpack.c.bf16 %v65_v9, %v64_v8  ;;  %826 = vmatpush3.bf16.msra.mxu0 %v825_v6  ;;  %v35_v16 = vld [vmem:[%s1533_s1 + $0x18] sm:$0xff]  ;;  %v82_v17 = vld [vmem:[%s1533_s1 + $0x190] sm:$0xff]  ;;  %v52_v23 = vld [vmem:[%s1533_s1 + $0xa0] sm:$0xff]  ;;  %v183_v6 = vshrl.u32 %v182_v56, 7 }
   0x6   :  { %v83_v18 = vld [vmem:[%s1533_s1 + $0x198] sm:$0xff]  ;;  %856 = vmatprep.subr.bf16.mxu1 %v855_v10  ;;  %v829_v19 = vpack.c.bf16 %v35_v16, %v34_v14  ;;  %v66_v21 = vld [vmem:[%s1533_s1 + $0x110] sm:$0xff]  ;;  %828 = vmatprep.subr.bf16.mxu0 %v827_v15  ;;  %v53_v25 = vld [vmem:[%s1533_s1 + $0xa8] sm:$0xff] }
   0x7   :  { %v859_v20 = vpack.c.bf16 %v83_v18, %v82_v17  ;;  %v67_v22 = vld [vmem:[%s1533_s1 + $0x118] sm:$0xff]  ;;  %858 = vmatpush3.bf16.msra.mxu1 %v857_v11  ;;  %v36_v26 = vld [vmem:[%s1533_s1 + $0x20] sm:$0xff]  ;;  %v37_v27 = vld [vmem:[%s1533_s1 + $0x28] sm:$0xff]  ;;  %v831_v28 = vpack.c.bf16 %v53_v25, %v52_v23  ;;  %v1246_v23 = vsub.s32 %v181_v5, %v183_v6 }
   0x8   :  { %v861_v24 = vpack.c.bf16 %v67_v22, %v66_v21  ;;  %v84_v29 = vld [vmem:[%s1533_s1 + $0x1a0] sm:$0xff]  ;;  %v85_v30 = vld [vmem:[%s1533_s1 + $0x1a8] sm:$0xff]  ;;  %v833_v32 = vpack.c.bf16 %v37_v27, %v36_v26  ;;  %v54_v35 = vld [vmem:[%s1533_s1 + $0xb0] sm:$0xff] }
   0x9   :  { %860 = vmatprep.subr.bf16.mxu1 %v859_v20  ;;  %v68_v31 = vld [vmem:[%s1533_s1 + $0x120] sm:$0xff]  ;;  %830 = vmatpush3.bf16.msra.mxu0 %v829_v19  ;;  %v863_v33 = vpack.c.bf16 %v85_v30, %v84_v29  ;;  %v69_v34 = vld [vmem:[%s1533_s1 + $0x128] sm:$0xff]  ;;  %v55_v36 = vld [vmem:[%s1533_s1 + $0xb8] sm:$0xff] }
   0xa   :  { %832 = vmatprep.subr.bf16.mxu0 %v831_v28  ;;  %v835_v37 = vpack.c.bf16 %v55_v36, %v54_v35  ;;  %v38_v38 = vld [vmem:[%s1533_s1 + $0x30] sm:$0xff]  ;;  %v39_v39 = vld [vmem:[%s1533_s1 + $0x38] sm:$0xff]  ;;  %v865_v41 = vpack.c.bf16 %v69_v34, %v68_v31  ;;  %v56_v46 = vld [vmem:[%s1533_s1 + $0xc0] sm:$0xff] }
   0xb   :  { %v86_v40 = vld [vmem:[%s1533_s1 + $0x1b0] sm:$0xff]  ;;  %862 = vmatpush3.bf16.msra.mxu1 %v861_v24  ;;  %v87_v42 = vld [vmem:[%s1533_s1 + $0x1b8] sm:$0xff]  ;;  %v57_v47 = vld [vmem:[%s1533_s1 + $0xc8] sm:$0xff]  ;;  %v837_v48 = vpack.c.bf16 %v39_v39, %v38_v38 }
   0xc   :  { %v70_v43 = vld [vmem:[%s1533_s1 + $0x130] sm:$0xff]  ;;  %864 = vmatprep.subr.bf16.mxu1 %v863_v33  ;;  %v867_v44 = vpack.c.bf16 %v87_v42, %v86_v40  ;;  %v71_v45 = vld [vmem:[%s1533_s1 + $0x138] sm:$0xff]  ;;  %v88_v49 = vld [vmem:[%s1533_s1 + $0x1c0] sm:$0xff]  ;;  %v839_v51 = vpack.c.bf16 %v57_v47, %v56_v46 }
   0xd   :  { %834 = vmatpush3.bf16.msra.mxu0 %v833_v32  ;;  %v89_v50 = vld [vmem:[%s1533_s1 + $0x1c8] sm:$0xff]  ;;  %v40_v52 = vld [vmem:[%s1533_s1 + $0x40] sm:$0xff]  ;;  %v869_v57 = vpack.c.bf16 %v71_v45, %v70_v43  ;;  %v58_v58 = vld [vmem:[%s1533_s1 + $0xd0] sm:$0xff] }
   0xe   :  { %836 = vmatprep.subr.bf16.mxu0 %v835_v37  ;;  %v41_v53 = vld [vmem:[%s1533_s1 + $0x48] sm:$0xff]  ;;  %v59_v59 = vld [vmem:[%s1533_s1 + $0xd8] sm:$0xff]  ;;  %v871_v60 = vpack.c.bf16 %v89_v50, %v88_v49  ;;  %v72_v61 = vld [vmem:[%s1533_s1 + $0x140] sm:$0xff] }
   0xf   :  { %866 = vmatpush3.bf16.msra.mxu1 %v865_v41  ;;  %v73_v62 = vld [vmem:[%s1533_s1 + $0x148] sm:$0xff]  ;;  %v841_v63 = vpack.c.bf16 %v41_v53, %v40_v52  ;;  %v90_v0 = vld [vmem:[%s1533_s1 + $0x1d0] sm:$0xff]  ;;  %v91_v1 = vld [vmem:[%s1533_s1 + $0x1d8] sm:$0xff]  ;;  %v843_v2 = vpack.c.bf16 %v59_v59, %v58_v58 }
  0x10   :  { %868 = vmatprep.subr.bf16.mxu1 %v867_v44  ;;  %v42_v3 = vld [vmem:[%s1533_s1 + $0x50] sm:$0xff]  ;;  %v43_v4 = vld [vmem:[%s1533_s1 + $0x58] sm:$0xff]  ;;  %v873_v7 = vpack.c.bf16 %v73_v62, %v72_v61  ;;  %v60_v8 = vld [vmem:[%s1533_s1 + $0xe0] sm:$0xff]  ;;  %v875_v10 = vpack.c.bf16 %v91_v1, %v90_v0 }
  0x11   :  { %838 = vmatpush3.bf16.msra.mxu0 %v837_v48  ;;  %v61_v9 = vld [vmem:[%s1533_s1 + $0xe8] sm:$0xff]  ;;  %v74_v11 = vld [vmem:[%s1533_s1 + $0x150] sm:$0xff]  ;;  %v75_v12 = vld [vmem:[%s1533_s1 + $0x158] sm:$0xff]  ;;  %v845_v14 = vpack.c.bf16 %v43_v4, %v42_v3 }
  0x12   :  { %840 = vmatprep.subr.bf16.mxu0 %v839_v51  ;;  %v44_v13 = vld [vmem:[%s1533_s1 + $0x60] sm:$0xff]  ;;  %v45_v15 = vld [vmem:[%s1533_s1 + $0x68] sm:$0xff]  ;;  %v847_v18 = vpack.c.bf16 %v61_v9, %v60_v8  ;;  %v62_v21 = vld [vmem:[%s1533_s1 + $0xf0] sm:$0xff]  ;;  %v877_v24 = vpack.c.bf16 %v75_v12, %v74_v11 }
  0x13   :  { %870 = vmatpush3.bf16.msra.mxu1 %v869_v57  ;;  %v92_v16 = vld [vmem:[%s1533_s1 + $0x1e0] sm:$0xff]  ;;  %v93_v17 = vld [vmem:[%s1533_s1 + $0x1e8] sm:$0xff]  ;;  %v63_v22 = vld [vmem:[%s1533_s1 + $0xf8] sm:$0xff]  ;;  %v849_v29 = vpack.c.bf16 %v45_v15, %v44_v13 }
  0x14   :  { %872 = vmatprep.subr.bf16.mxu1 %v871_v60  ;;  %v76_v19 = vld [vmem:[%s1533_s1 + $0x160] sm:$0xff]  ;;  %v77_v20 = vld [vmem:[%s1533_s1 + $0x168] sm:$0xff]  ;;  %v879_v25 = vpack.c.bf16 %v93_v17, %v92_v16  ;;  %v94_v26 = vld [vmem:[%s1533_s1 + $0x1f0] sm:$0xff]  ;;  %v851_v33 = vpack.c.bf16 %v63_v22, %v62_v21 }
  0x15   :  { %842 = vmatpush3.bf16.msra.mxu0 %v841_v63  ;;  %v965_v27 = vld [vmem:[%s1532_s0] ss:$16 sps:$4 sm:$0xff]   ;;  %v95_v30 = vld [vmem:[%s1533_s1 + $0x1f8] sm:$0xff]  ;;  %v969_v31 = vld [vmem:[%s1532_s0 + $0x4] ss:$16 sps:$4 sm:$0xff]   ;;  %v881_v38 = vpack.c.bf16 %v77_v20, %v76_v19 }
  0x16   :  { %844 = vmatprep.subr.bf16.mxu0 %v843_v2  ;;  %v967_v28 = vld [vmem:[%s1532_s0 + $0x20] ss:$16 sps:$4 sm:$0xff]   ;;  %v970_v32 = vld [vmem:[%s1532_s0 + $0x24] ss:$16 sps:$4 sm:$0xff]   ;;  %v47_v35 = vld [vmem:[%s1533_s1 + $0x78] sm:$0xff]  ;;  %v185_v36 = vrot.slane %v965_v27, %v1246_v23  ;;  %v192_v41 = vrot.slane %v969_v31, %v1246_v23  ;;  %v883_v43 = vpack.c.bf16 %v95_v30, %v94_v26 }
  0x17   :  { %874 = vmatpush3.bf16.msra.mxu1 %v873_v7  ;;  %v46_v34 = vld [vmem:[%s1533_s1 + $0x70] sm:$0xff]  ;;  %v199_v37 = vrot.slane %v967_v28, %v1246_v23  ;;  %v112_v39 = vld [vmem:[%s1533_s1 + $0x280] sm:$0xff]  ;;  %v113_v40 = vld [vmem:[%s1533_s1 + $0x288] sm:$0xff]  ;;  %v206_v42 = vrot.slane %v970_v32, %v1246_v23 }
  0x18   :  { %876 = vmatprep.subr.bf16.mxu1 %v875_v10  ;;  %v78_v44 = vld [vmem:[%s1533_s1 + $0x170] sm:$0xff]  ;;  %v79_v45 = vld [vmem:[%s1533_s1 + $0x178] sm:$0xff]  ;;  %v853_v47 = vpack.c.bf16 %v47_v35, %v46_v34  ;;  %v144_v49 = vld [vmem:[%s1533_s1 + $0x380] sm:$0xff]  ;;  %v887_v51 = vpack.c.bf16 %v113_v40, %v112_v39 }
  0x19   :  { %846 = vmatpush3.bf16.msra.mxu0 %v845_v14  ;;  %v208_v46 = vcombine.high %v185_v36, %v199_v37  ;;  %v210_v48 = vcombine.high %v192_v41, %v206_v42  ;;  %v145_v50 = vld [vmem:[%s1533_s1 + $0x388] sm:$0xff]  ;;  %v96_v52 = vld [vmem:[%s1533_s1 + $0x200] sm:$0xff]  ;;  %v885_v54 = vpack.c.bf16 %v79_v45, %v78_v44  ;;  %v114_v55 = vld [vmem:[%s1533_s1 + $0x290] sm:$0xff]  ;;  %v207_v57 = vcombine.low %v185_v36, %v199_v37 }
  0x1a   :  { %848 = vmatprep.subr.bf16.mxu0 %v847_v18  ;;  %v97_v53 = vld [vmem:[%s1533_s1 + $0x208] sm:$0xff]  ;;  %v115_v56 = vld [vmem:[%s1533_s1 + $0x298] sm:$0xff]  ;;  %v919_v58 = vpack.c.bf16 %v145_v50, %v144_v49  ;;  %v128_v59 = vld [vmem:[%s1533_s1 + $0x300] sm:$0xff]  ;;  %v209_v0 = vcombine.low %v192_v41, %v206_v42 }
  0x1b   :  { %878 = vmatpush3.bf16.msra.mxu1 %v877_v24  ;;  %319 = vmatprep.mubr.f32.mxu0 %v208_v46  ;;  %v129_v60 = vld [vmem:[%s1533_s1 + $0x308] sm:$0xff]  ;;  %v889_v61 = vpack.c.bf16 %v97_v53, %v96_v52  ;;  %v146_v62 = vld [vmem:[%s1533_s1 + $0x390] sm:$0xff]  ;;  %v147_v63 = vld [vmem:[%s1533_s1 + $0x398] sm:$0xff]  ;;  %v891_v1 = vpack.c.bf16 %v115_v56, %v114_v55 }
  0x1c   :  { %880 = vmatprep.subr.bf16.mxu1 %v879_v25  ;;  %389 = vmatprep.mubr.f32.mxu1 %v210_v48  ;;  %v98_v2 = vld [vmem:[%s1533_s1 + $0x210] sm:$0xff]  ;;  %v99_v3 = vld [vmem:[%s1533_s1 + $0x218] sm:$0xff]  ;;  %v921_v4 = vpack.c.bf16 %v129_v60, %v128_v59  ;;  %v116_v5 = vld [vmem:[%s1533_s1 + $0x2a0] sm:$0xff]  ;;  %v923_v7 = vpack.c.bf16 %v147_v63, %v146_v62 }
  0x1d   :  { %850 = vmatpush3.bf16.msra.mxu0 %v849_v29  ;;  %v117_v6 = vld [vmem:[%s1533_s1 + $0x2a8] sm:$0xff]  ;;  %v130_v8 = vld [vmem:[%s1533_s1 + $0x310] sm:$0xff]  ;;  %v131_v9 = vld [vmem:[%s1533_s1 + $0x318] sm:$0xff]  ;;  %v893_v10 = vpack.c.bf16 %v99_v3, %v98_v2 }
  0x1e   :  { %852 = vmatprep.subr.bf16.mxu0 %v851_v33  ;;  %v148_v11 = vld [vmem:[%s1533_s1 + $0x3a0] sm:$0xff]  ;;  %v149_v12 = vld [vmem:[%s1533_s1 + $0x3a8] sm:$0xff]  ;;  %v895_v13 = vpack.c.bf16 %v117_v6, %v116_v5  ;;  %v925_v16 = vpack.c.bf16 %v131_v9, %v130_v8  ;;  %v118_v17 = vld [vmem:[%s1533_s1 + $0x2b0] sm:$0xff] }
  0x1f   :  { %882 = vmatpush3.bf16.msra.mxu1 %v881_v38  ;;  %v100_v14 = vld [vmem:[%s1533_s1 + $0x220] sm:$0xff]  ;;  %v101_v15 = vld [vmem:[%s1533_s1 + $0x228] sm:$0xff]  ;;  %v119_v18 = vld [vmem:[%s1533_s1 + $0x2b8] sm:$0xff]  ;;  %v927_v19 = vpack.c.bf16 %v149_v12, %v148_v11 }
  0x20   :  { %884 = vmatprep.subr.bf16.mxu1 %v883_v43  ;;  %v132_v20 = vld [vmem:[%s1533_s1 + $0x320] sm:$0xff]  ;;  %v133_v21 = vld [vmem:[%s1533_s1 + $0x328] sm:$0xff]  ;;  %v897_v22 = vpack.c.bf16 %v101_v15, %v100_v14  ;;  %v150_v24 = vld [vmem:[%s1533_s1 + $0x3b0] sm:$0xff]  ;;  %v899_v26 = vpack.c.bf16 %v119_v18, %v118_v17 }
  0x21   :  { %854 = vmatpush3.bf16.msra.mxu0 %v853_v47  ;;  %v151_v25 = vld [vmem:[%s1533_s1 + $0x3b8] sm:$0xff]  ;;  %v102_v27 = vld [vmem:[%s1533_s1 + $0x230] sm:$0xff]  ;;  %v929_v29 = vpack.c.bf16 %v133_v21, %v132_v20  ;;  %v120_v30 = vld [vmem:[%s1533_s1 + $0x2c0] sm:$0xff] }
  0x22   :  { %888 = vmatprep.subr.bf16.mxu0 %v887_v51  ;;  %v103_v28 = vld [vmem:[%s1533_s1 + $0x238] sm:$0xff]  ;;  %v121_v31 = vld [vmem:[%s1533_s1 + $0x2c8] sm:$0xff]  ;;  %v931_v32 = vpack.c.bf16 %v151_v25, %v150_v24  ;;  %v134_v33 = vld [vmem:[%s1533_s1 + $0x330] sm:$0xff] }
  0x23   :  { %886 = vmatpush3.bf16.msra.mxu1 %v885_v54  ;;  %v135_v34 = vld [vmem:[%s1533_s1 + $0x338] sm:$0xff]  ;;  %v104_v35 = vld [vmem:[%s1533_s1 + $0x240] sm:$0xff]  ;;  %v901_v36 = vpack.c.bf16 %v103_v28, %v102_v27  ;;  %v105_v37 = vld [vmem:[%s1533_s1 + $0x248] sm:$0xff]  ;;  %v903_v40 = vpack.c.bf16 %v121_v31, %v120_v30 }
  0x24   :  { %320 = vmatmul.mubr.f32.vlgmr.msra.gmra.mrb[0].mxu0 %v207_v57  ;;  %920 = vmatprep.subr.bf16.mxu1 %v919_v58  ;;  %v152_v38 = vld [vmem:[%s1533_s1 + $0x3c0] sm:$0xff]  ;;  %v153_v39 = vld [vmem:[%s1533_s1 + $0x3c8] sm:$0xff]  ;;  %v122_v43 = vld [vmem:[%s1533_s1 + $0x2d0] sm:$0xff]  ;;  %v933_v45 = vpack.c.bf16 %v135_v34, %v134_v33  ;;  %v905_v50 = vpack.c.bf16 %v105_v37, %v104_v35  ;;  %v1030_v34 = vmov 0.0|0.0  }
  0x25   :  { %890 = vmatpush3.bf16.msra.mxu0 %v889_v61  ;;  %v136_v41 = vld [vmem:[%s1533_s1 + $0x340] sm:$0xff]  ;;  %v137_v42 = vld [vmem:[%s1533_s1 + $0x348] sm:$0xff]  ;;  %v123_v44 = vld [vmem:[%s1533_s1 + $0x2d8] sm:$0xff]  ;;  %v935_v46 = vpack.c.bf16 %v153_v39, %v152_v38  ;;  %v1032_v38 = vmov 0.0  }
  0x26   :  { %390 = vmatmul.mubr.f32.vlgmr.msra.gmra.mrb[0].mxu1 %v209_v0  ;;  %892 = vmatprep.subr.bf16.mxu0 %v891_v1  ;;  %v971_v47 = vld [vmem:[%s1532_s0 + $0x8] ss:$16 sps:$4 sm:$0xff]   ;;  %v975_v49 = vld [vmem:[%s1532_s0 + $0xc] ss:$16 sps:$4 sm:$0xff]   ;;  %v154_v51 = vld [vmem:[%s1533_s1 + $0x3d0] sm:$0xff]  ;;  %v907_v54 = vpack.c.bf16 %v123_v44, %v122_v43  ;;  %v937_v60 = vpack.c.bf16 %v137_v42, %v136_v41 }
  0x27   :  { %922 = vmatpush3.bf16.msra.mxu1 %v921_v4  ;;  %v973_v48 = vld [vmem:[%s1532_s0 + $0x28] ss:$16 sps:$4 sm:$0xff]   ;;  %v976_v53 = vld [vmem:[%s1532_s0 + $0x2c] ss:$16 sps:$4 sm:$0xff]   ;;  %v106_v55 = vld [vmem:[%s1533_s1 + $0x250] sm:$0xff]  ;;  %v221_v57 = vrot.slane %v971_v47, %v1246_v23  ;;  %v228_v59 = vrot.slane %v975_v49, %v1246_v23 }
  0x28   :  { %924 = vmatprep.subr.bf16.mxu1 %v923_v7  ;;  %v155_v52 = vld [vmem:[%s1533_s1 + $0x3d8] sm:$0xff]  ;;  %v235_v58 = vrot.slane %v973_v48, %v1246_v23  ;;  %v124_v61 = vld [vmem:[%s1533_s1 + $0x2e0] sm:$0xff]  ;;  %v125_v62 = vld [vmem:[%s1533_s1 + $0x2e8] sm:$0xff]  ;;  %v242_v63 = vrot.slane %v976_v53, %v1246_v23 }
  0x29   :  { %894 = vmatpush3.bf16.msra.mxu0 %v893_v10  ;;  %v107_v56 = vld [vmem:[%s1533_s1 + $0x258] sm:$0xff]  ;;  %v939_v0 = vpack.c.bf16 %v155_v52, %v154_v51  ;;  %v138_v1 = vld [vmem:[%s1533_s1 + $0x350] sm:$0xff]  ;;  %v156_v5 = vld [vmem:[%s1533_s1 + $0x3e0] sm:$0xff]  ;;  %v911_v7 = vpack.c.bf16 %v125_v62, %v124_v61 }
  0x2a   :  { %896 = vmatprep.subr.bf16.mxu0 %v895_v13  ;;  %v139_v2 = vld [vmem:[%s1533_s1 + $0x358] sm:$0xff]  ;;  %v244_v3 = vcombine.high %v221_v57, %v235_v58  ;;  %v909_v4 = vpack.c.bf16 %v107_v56, %v106_v55  ;;  %v157_v23 = vld [vmem:[%s1533_s1 + $0x3e8] sm:$0xff]  ;;  %v246_v6 = vcombine.high %v228_v59, %v242_v63  ;;  %v108_v8 = vld [vmem:[%s1533_s1 + $0x260] sm:$0xff]  ;;  %v245_v30 = vcombine.low %v228_v59, %v242_v63 }
  0x2b   :  { %926 = vmatpush3.bf16.msra.mxu1 %v925_v16  ;;  %v109_v9 = vld [vmem:[%s1533_s1 + $0x268] sm:$0xff]  ;;  %v941_v10 = vpack.c.bf16 %v139_v2, %v138_v1  ;;  %v126_v11 = vld [vmem:[%s1533_s1 + $0x2f0] sm:$0xff]  ;;  %v127_v12 = vld [vmem:[%s1533_s1 + $0x2f8] sm:$0xff]  ;;  %v943_v13 = vpack.c.bf16 %v157_v23, %v156_v5 }
  0x2c   :  { %928 = vmatprep.subr.bf16.mxu1 %v927_v19  ;;  %459 = vmatprep.mubr.f32.mxu0 %v244_v3  ;;  %v140_v14 = vld [vmem:[%s1533_s1 + $0x360] sm:$0xff]  ;;  %v141_v15 = vld [vmem:[%s1533_s1 + $0x368] sm:$0xff]  ;;  %v913_v16 = vpack.c.bf16 %v109_v9, %v108_v8  ;;  %v158_v17 = vld [vmem:[%s1533_s1 + $0x3f0] sm:$0xff]  ;;  %v915_v19 = vpack.c.bf16 %v127_v12, %v126_v11 }
  0x2d   :  { %898 = vmatpush3.bf16.msra.mxu0 %v897_v22  ;;  %529 = vmatprep.mubr.f32.mxu1 %v246_v6  ;;  %v159_v18 = vld [vmem:[%s1533_s1 + $0x3f8] sm:$0xff]  ;;  %v110_v20 = vld [vmem:[%s1533_s1 + $0x270] sm:$0xff]  ;;  %v945_v22 = vpack.c.bf16 %v141_v15, %v140_v14  ;;  %v536_v31 = vld [vmem:[%s1535_s3] sm:$0xff] }
  0x2e   :  { %900 = vmatprep.subr.bf16.mxu0 %v899_v26  ;;  %v111_v21 = vld [vmem:[%s1533_s1 + $0x278] sm:$0xff]  ;;  %v947_v24 = vpack.c.bf16 %v159_v18, %v158_v17  ;;  %v142_v25 = vld [vmem:[%s1533_s1 + $0x370] sm:$0xff] }
  0x2f   :  { %930 = vmatpush3.bf16.msra.mxu1 %v929_v29  ;;  %v143_v26 = vld [vmem:[%s1533_s1 + $0x378] sm:$0xff]  ;;  %v917_v27 = vpack.c.bf16 %v111_v21, %v110_v20  ;;  %v243_v29 = vcombine.low %v221_v57, %v235_v58  ;;  %v538_v35 = vld [vmem:[%s1535_s3 + $0x10] sm:$0xff]  ;;  %v665_v57 = vld [vmem:[%s1536_s4] ss:$0 sm:$0xff] }
  0x30   :  { %932 = vmatprep.subr.bf16.mxu1 %v931_v32  ;;  %v949_v28 = vpack.c.bf16 %v143_v26, %v142_v25  ;;  %v537_v32 = vld [vmem:[%s1535_s3 + $0x8] sm:$0xff] }
  0x31   :  { %902 = vmatpush3.bf16.msra.mxu0 %v901_v36  ;;  %v952_v33 = vpack.c.bf16 %v537_v32, %v536_v31  ;;  %v539_v36 = vld [vmem:[%s1535_s3 + $0x18] sm:$0xff] }
  0x32   :  { %904 = vmatprep.subr.bf16.mxu0 %v903_v40  ;;  %v955_v37 = vpack.c.bf16 %v539_v36, %v538_v35  ;;  %v664_v40 = vld [vmem:[%s1534_s2] ss:$0 sm:$0xff] }
  0x33   :  { %934 = vmatpush3.bf16.msra.mxu1 %v933_v45 }
  0x34   :  { %936 = vmatprep.subr.bf16.mxu1 %v935_v46 }
  0x35   :  { %906 = vmatpush3.bf16.msra.mxu0 %v905_v50 }
  0x36   :  { %908 = vmatprep.subr.bf16.mxu0 %v907_v54 }
  0x37   :  { %938 = vmatpush3.bf16.msra.mxu1 %v937_v60 }
  0x38   :  { %940 = vmatprep.subr.bf16.mxu1 %v939_v0 }
  0x39   :  { %910 = vmatpush3.bf16.msra.mxu0 %v909_v4 }
  0x3a   :  { %912 = vmatprep.subr.bf16.mxu0 %v911_v7 }
  0x3b   :  { %942 = vmatpush3.bf16.msra.mxu1 %v941_v10 }
  0x3c   :  { %944 = vmatprep.subr.bf16.mxu1 %v943_v13 }
  0x3d   :  { %914 = vmatpush3.bf16.msra.mxu0 %v913_v16 }
  0x3e   :  { %916 = vmatprep.subr.bf16.mxu0 %v915_v19 }
  0x3f   :  { %946 = vmatpush3.bf16.msra.mxu1 %v945_v22 }
  0x40   :  { %948 = vmatprep.subr.bf16.mxu1 %v947_v24 }
  0x41   :  { %918 = vmatpush3.bf16.msra.mxu0 %v917_v27 }
  0x42   :  { %951 = vmatprep.subr.bf16.mxu0 %v1030_v34 }
  0x43   :  { %950 = vmatpush3.bf16.msra.mxu1 %v949_v28 }
  0x44   :  { %460 = vmatmul.mubr.f32.vlgmr.msra.gmra.mrb[2].mxu0 %v243_v29 }
  0x45   :  { %953 = vmatpush3.bf16.msra.mxu0 %v952_v33  ;;  %820 = vmatprep.mubr.msk.f32.mxu0 %vm1031_vm0, %v1032_v38 }
  0x46   :  { %530 = vmatmul.mubr.f32.vlgmr.msra.gmra.mrb[2].mxu1 %v245_v30  ;;  %954 = vmatprep.subr.bf16.mxu0 %v1030_v34 }
  0x49   :  { %956 = vmatpush3.bf16.msra.mxu0 %v955_v37 }
  0xf7   :  { %v699_v39 = vpop.f32.mrb[0].mxu0 }
  0xf8   :  { %v700_v41 = vpop.f32.mrb[1].mxu0 }
  0xf9   :  { %v701_v42 = vadd.f32 %v700_v41, %v699_v39  ;;  %v734_v43 = vpop.f32.mrb[0].mxu1 }
  0xfa   :  { %v735_v44 = vpop.f32.mrb[1].mxu1 }
  0xfb   :  { %v322_v45 = vadd.f32 %v701_v42, %v664_v40  ;;  %v736_v46 = vadd.f32 %v735_v44, %v734_v43 }
  0xfd   :  { %v392_v47 = vadd.f32 %v736_v46, %v322_v45 }
 0x117   :  { %v769_v48 = vpop.f32.mrb[2].mxu0 }
 0x118   :  { %v770_v49 = vpop.f32.mrb[3].mxu0 }
 0x119   :  { %v771_v50 = vadd.f32 %v770_v49, %v769_v48  ;;  %v804_v51 = vpop.f32.mrb[2].mxu1 }
 0x11a   :  { %v805_v52 = vpop.f32.mrb[3].mxu1 }
 0x11b   :  { %v462_v53 = vadd.f32 %v771_v50, %v392_v47  ;;  %v806_v54 = vadd.f32 %v805_v52, %v804_v51 }
 0x11d   :  { %v532_v55 = vadd.f32 %v806_v54, %v462_v53 }
 0x11f   :  { %v535_v56 = vmax.f32 %v532_v55, 0.0 }
 0x121   :  { %821 = vmatmul.mubr.msk.f32.vlgmr.msra.gmra.mrb[4].mxu0 %vm547_vm1, %v535_v56 }
 0x1f4   :  { %v617_v58 = vpop.f32.mrb[4].mxu0 }
 0x1f5   :  { %v618_v59 = vadd.f32 %v665_v57, %v617_v58  ;;  %v822_v60 = vpop.f32.mrb[5].mxu0 }
 0x1f7   :  { %621 = vst [vmem:[#allocation2] sm:$0xff] %v618_v59  ;;  %622 = vmax.xlane.f32.xlu0 %v618_v59 }
 0x284   :  { %v623_v61 = vpop.xlane.xlu0 %622 }
 0x285   :  { %v624_v62 = vsub.f32 %v618_v59, %v623_v61 }
 0x287   :  { %v625_v63 = vmul.f32 1.442695, %v624_v62 }
 0x289   :  { %977 = vpow2.f32 %v625_v63 }
 0x293   :  { %v978_v0 = vpop.eup %977 }
 0x294   :  { %627 = vadd.xlane.f32.xlu0 %v978_v0 }
 0x321   :  { %v628_v1 = vpop.xlane.xlu0 %627 }
 0x322   :  { %979 = vrcp.f32 %v628_v1 }
 0x32c   :  { %v980_v2 = vpop.eup %979 }
 0x32d   :  { %v630_v3 = vmul.f32 %v980_v2, %v978_v0 }
 0x32f   :  { %631 = vst [vmem:[#allocation4] sm:$0xff] %v630_v3 }
 0x330   :  { %636 = vsyncadd [#allocation3], 96  ;;  %s1033_s12 = smov [#allocation2]  }
 0x331   :  { %s637_s13 = sshll.u32 %s1033_s12, 4  ;;  %s638_s13 = int_to_ptr.vmem [resolvable:$true] %s637_s13 }
 0x332   :  { %s981_s4 = scalar_lea.vmem %s638_s13, 32  ;;  %s985_s14 = scalar_lea.vmem %s638_s13, 128 }
 0x333   :  { %p982_p0 = scmp.ne.s32.totalorder %s638_s13, %s981_s4  ;;  %p986_p1 = scmp.lt.s32.totalorder %s638_s13, %s638_s13 }
 0x334   :  { %p987_p2 = scmp.lt.s32.totalorder %s985_s14, %s981_s4 }
 0x336   :  { %p988_p3 = por %p987_p2, %p986_p1 }
 0x338   :  { %p989_p4 = pnand %p988_p3, %p982_p0 }
 0x33a   :  { %992 = shalt.err (!%p989_p4)
}
 0x33b   :  { %s993_s17 = scalar_lea.hbm %s1537_s5, 32 }
 0x33c   :  { %p994_p5 = scmp.ne.s32.totalorder %s1537_s5, %s993_s17  ;;  %p997_p6 = scmp.lt.u32.totalorder %s993_s17, %s1537_s5 }
 0x33e   :  { %p999_p7 = pnand %p997_p6, %p994_p5 }
 0x340   :  { %1002 = shalt.err (!%p999_p7)
}
 0x341   :  { %s1034_s21 = smov 32   ;;  %s1035_s22 = smov 2  }
 0x342   :  { %643 = dma.vmem_to_hbm [thread:$0]  %s638_s13, 32, %s1537_s5, [#allocation3], %s1034_s21, %s1034_s21, %s1035_s22  }
 0x343   :  { %648 = vsyncadd [#allocation5], 96  ;;  %s1036_s25 = smov [#allocation4]  }
 0x344   :  { %s649_s26 = sshll.u32 %s1036_s25, 4  ;;  %s650_s26 = int_to_ptr.vmem [resolvable:$true] %s649_s26 }
 0x345   :  { %s1003_s27 = scalar_lea.vmem %s650_s26, 32  ;;  %s1007_s28 = scalar_lea.vmem %s650_s26, 128 }
 0x346   :  { %p1004_p8 = scmp.ne.s32.totalorder %s650_s26, %s1003_s27  ;;  %p1008_p9 = scmp.lt.s32.totalorder %s650_s26, %s650_s26 }
 0x347   :  { %p1009_p10 = scmp.lt.s32.totalorder %s1007_s28, %s1003_s27 }
 0x349   :  { %p1010_p11 = por %p1009_p10, %p1008_p9 }
 0x34b   :  { %p1011_p12 = pnand %p1010_p11, %p1004_p8 }
 0x34d   :  { %1014 = shalt.err (!%p1011_p12)
}
 0x34e   :  { %s1015_s1 = scalar_lea.hbm %s1538_s6, 32 }
 0x34f   :  { %p1016_p13 = scmp.ne.s32.totalorder %s1538_s6, %s1015_s1  ;;  %p1019_p0 = scmp.lt.u32.totalorder %s1015_s1, %s1538_s6 }
 0x351   :  { %p1021_p1 = pnand %p1019_p0, %p1016_p13 }
 0x353   :  { %1024 = shalt.err (!%p1021_p1)
}
 0x354   :  { %655 = dma.vmem_to_hbm [thread:$0]  %s650_s26, 32, %s1538_s6, [#allocation5], %s1034_s21, %s1034_s21, %s1035_s22  }
 0x355   :  { %1025 = dma.done.wait [#allocation3], 128  }
 0x356   :  { %1026 = vsyncadd [#allocation3], 4294967168 }
 0x357   :  { %1027 = dma.done.wait [#allocation5], 128  }
 0x358   :  { %1028 = vsyncadd [#allocation5], 4294967168 }
 0x359   :  { %662 = vsyncpa [#allocation3], 1 }
 0x35a   :  { %663 = vsyncpa [#allocation5], 1 }

</bundles_post_ra>
